<compile_context>
chip_gen: v7x
topology: tpu7x:2x2x1
jax: 0.10.0
libtpu: 0.0.40
codegen_flags: <defaults>
</compile_context>

<pallas_src>
import numpy as np
import jax
import jax.numpy as jnp
from jax.experimental import pallas as pl
from jax.experimental.pallas import tpu as pltpu


def _round_up(x, m):
    return ((x + m - 1) // m) * m


def _vmem_capacity_bytes():
    """Physical VMEM per TensorCore; conservative (v7x-sized) fallback."""
    try:
        cap = getattr(pltpu.get_tpu_info(), "vmem_capacity_bytes", None)
        if cap:
            return int(cap)
    except Exception:
        pass
    return 64 * 1024 * 1024


def _choose_tile_l(lane_extents, tile_cap, bytes_per_lane):
    """Pick the common lane-tile size for the ragged per-degree lane axis.

    Cost = streamed bytes (incl. end-of-segment padding) + fixed per-grid-step
    overhead (~0.35 us ~ a few hundred KiB of HBM traffic). Prefer >= 4 grid
    steps (2 per v7x TensorCore) when it doesn't blow up padded traffic.
    """
    STEP_OVERHEAD_BYTES = 384 * 1024

    def eval_tile(t):
        segs = [_round_up(L, t) for L in lane_extents]
        n_tiles = sum(s // t for s in segs)
        cost = sum(segs) * bytes_per_lane + n_tiles * STEP_OVERHEAD_BYTES
        return cost, t, n_tiles

    cands = [eval_tile(t) for t in range(128, max(tile_cap, 128) + 1, 128)]
    best = min(cands, key=lambda c: (c[0], -c[1]))
    if best[2] < 4:
        wide = [c for c in cands if c[2] >= 4]
        if wide:
            alt = min(wide, key=lambda c: (c[0], -c[1]))
            if alt[0] <= 1.5 * best[0]:
                best = alt
    return best[1]


def _glinear_kernel(deg_ids_ref, w_ref, f_ref, o_ref):
    """One lane-tile grid step.

    w_ref: (c_out_pad, c_in_pad)  -- this tile's degree weight (VMEM resident
                                     across consecutive tiles of the degree)
    f_ref: (c_in_pad, tile_l)     -- lane-dense packed feature tile
    o_ref: (c_out_pad, tile_l)
    """
    del deg_ids_ref  # only used by the index_maps
    o_ref[...] = jnp.dot(
        w_ref[...], f_ref[...], preferred_element_type=jnp.float32
    ).astype(o_ref.dtype)


def glinear_forward(ws, f_dict):
    """Fused GLinear forward.

    ws:     (d_in+1, c_out, c_in)
    f_dict: {i: (N, c_in, 2*i+1)} for every i in 0..d_in
    returns {i: (N, c_out, 2*i+1)} in the activation dtype
    """
    degrees = sorted(f_dict.keys())
    d_in = max(degrees)
    if degrees != list(range(d_in + 1)):
        raise ValueError("f must contain every degree 0..d_in")
    n_deg = d_in + 1
    assert ws.shape[0] == n_deg
    c_out, c_in = int(ws.shape[1]), int(ws.shape[2])
    N = int(f_dict[0].shape[0])

    # Streaming dtype = activation dtype. Passing bf16 activations halves HBM
    # traffic (weights are quantized to bf16 too; accumulation stays f32).
    dtype = f_dict[0].dtype
    itemsize = jnp.dtype(dtype).itemsize
    sub = max(8, 32 // itemsize)               # sublane multiple: 8 f32 / 16 bf16
    c_in_pad = _round_up(c_in, sub)
    c_out_pad = _round_up(c_out, sub)

    # ---- generation-aware lane-tile sizing --------------------------------
    vmem_cap = _vmem_capacity_bytes()
    budget = int(vmem_cap * 0.55)              # double-buffered in+out tiles
    bytes_per_lane_db = 2 * (c_in_pad + c_out_pad) * itemsize
    tile_cap = max(128, min(32768, (budget // bytes_per_lane_db) // 128 * 128))
    lane_extents = [N * (2 * i + 1) for i in range(n_deg)]
    tile_l = _choose_tile_l(lane_extents, tile_cap,
                            (c_in_pad + c_out_pad) * itemsize)

    # ---- pack: ragged lane-dense slab, single concatenate -----------------
    parts, deg_of_tile, seg_offsets = [], [], []
    off = 0
    for i in range(n_deg):
        m_i = 2 * i + 1
        L_i = N * m_i
        seg = _round_up(L_i, tile_l)
        fi = jnp.transpose(f_dict[i].astype(dtype), (1, 0, 2)).reshape(c_in, L_i)
        parts.append(jnp.pad(fi, ((0, c_in_pad - c_in), (0, seg - L_i))))
        deg_of_tile += [i] * (seg // tile_l)
        seg_offsets.append(off)
        off += seg
    slab = jnp.concatenate(parts, axis=1)       # (c_in_pad, L_total)
    L_total = off
    num_tiles = len(deg_of_tile)
    deg_of_tile = jnp.asarray(np.asarray(deg_of_tile, dtype=np.int32))

    ws_p = jnp.pad(ws.astype(dtype),
                   ((0, 0), (0, c_out_pad - c_out), (0, c_in_pad - c_in)))

    # ---- VMEM limit: actual double-buffered usage + headroom, per-chip cap
    needed = (2 * (c_in_pad + c_out_pad) * tile_l * itemsize
              + 2 * c_out_pad * c_in_pad * itemsize)
    vmem_limit = min(max(needed + (8 << 20), 16 << 20), int(vmem_cap * 0.75))

    # ---- single fused pallas_call over the ragged lane axis ---------------
    out_slab = pl.pallas_call(
        _glinear_kernel,
        out_shape=jax.ShapeDtypeStruct((c_out_pad, L_total), dtype),
        grid_spec=pltpu.PrefetchScalarGridSpec(
            num_scalar_prefetch=1,
            grid=(num_tiles,),
            in_specs=[
                # Weight of this tile's degree (SMEM table lookup); block index
                # repeats across consecutive tiles of a degree -> no re-DMA.
                pl.BlockSpec((None, c_out_pad, c_in_pad),
                             lambda l, deg: (deg[l], 0, 0)),
                # Lane-dense feature tile of the ragged slab.
                pl.BlockSpec((c_in_pad, tile_l), lambda l, deg: (0, l)),
            ],
            out_specs=pl.BlockSpec((c_out_pad, tile_l), lambda l, deg: (0, l)),
        ),
        compiler_params=pltpu.CompilerParams(
            dimension_semantics=("parallel",),
            vmem_limit_bytes=vmem_limit,
        ),
    )(deg_of_tile, ws_p, slab)

    # ---- unpack: slice off per-degree padding, restore (N, c_out, m) ------
    # TODO(synk): callers chaining several GLinear layers should keep the packed
    # (channels, lanes) slab layout between layers to skip this transpose pass.
    out = {}
    for i in range(n_deg):
        m_i = 2 * i + 1
        L_i = N * m_i
        blk = out_slab[:c_out, seg_offsets[i]:seg_offsets[i] + L_i]
        out[i] = jnp.transpose(blk.reshape(c_out, N, m_i), (1, 0, 2))
    return out


def glinear_reference(ws, f_dict):
    """Pure-JAX reference matching the PyTorch forward (f32 accumulation)."""
    return {
        i: jnp.einsum(
            "oi,nim->nom", ws[i], f_dict[i], preferred_element_type=jnp.float32
        ).astype(f_dict[i].dtype)
        for i in f_dict
    }


def init_glinear_params(key, d_in, c_in, c_out, dtype=jnp.float32):
    """xavier_normal_ on (d_in+1, c_out, c_in): std = sqrt(2/(fan_in+fan_out))."""
    std = (2.0 / (c_in + c_out)) ** 0.5
    return (std * jax.random.normal(key, (d_in + 1, c_out, c_in))).astype(dtype)


if __name__ == "__main__":
    key = jax.random.PRNGKey(0)

    # Small shapes consistent with the module.
    d_in = 2      # degrees 0, 1, 2  ->  m = 1, 3, 5
    c_in = 4
    c_out = 8
    N = 8         # batch / number of nodes

    k_w, *k_f = jax.random.split(key, 2 + d_in)
    ws = init_glinear_params(k_w, d_in, c_in, c_out)
    f = {
        i: jax.random.normal(k_f[i], (N, c_in, 2 * i + 1), dtype=jnp.float32)
        for i in range(d_in + 1)
    }

    fwd = jax.jit(glinear_forward)

    # f32 streaming path: must match the reference tightly.
    out = jax.tree_util.tree_map(jax.block_until_ready, fwd(ws, f))
    ref = glinear_reference(ws, f)
    for i in range(d_in + 1):
        assert out[i].shape == (N, c_out, 2 * i + 1), out[i].shape
        assert jnp.allclose(out[i], ref[i], atol=1e-5, rtol=1e-5), f"mismatch deg {i}"

    # bf16 streaming path (halves HBM bytes; biggest payoff on v5e). Weights are
    # quantized to bf16 for streaming; accumulation stays f32 in the kernel.
    f_bf = {i: v.astype(jnp.bfloat16) for i, v in f.items()}
    out_bf = jax.tree_util.tree_map(jax.block_until_ready, fwd(ws, f_bf))
    ref_bf = glinear_reference(
        ws.astype(jnp.bfloat16).astype(jnp.float32),
        {i: v.astype(jnp.float32) for i, v in f_bf.items()},
    )
    for i in range(d_in + 1):
        assert out_bf[i].dtype == jnp.bfloat16
        assert jnp.allclose(out_bf[i].astype(jnp.float32), ref_bf[i],
                            atol=5e-3, rtol=5e-3), f"bf16 mismatch deg {i}"

    print("KERNEL_OK")
</pallas_src>

<mosaic_0001>
module attributes {stable_mosaic.version = 11 : i64} {
  func.func @_glinear_kernel(%arg0: i32, %arg1: memref<3xi32, #tpu.memory_space<smem>>, %arg2: memref<1x8x8xf32, #tpu.memory_space<vmem>>, %arg3: memref<8x128xf32, #tpu.memory_space<vmem>>, %arg4: memref<8x128xf32, #tpu.memory_space<vmem>>) attributes {dimension_semantics = [#tpu.dimension_semantics<parallel>], iteration_bounds = array<i64: 3>, scalar_prefetch = 1 : i64, scratch_operands = 0 : i64, tpu.core_type = #tpu.core_type<tc>, window_params = [{transform_indices = @transform_0, window_bounds = array<i64: 1, 8, 8>}, {transform_indices = @transform_1, window_bounds = array<i64: 8, 128>}, {transform_indices = @transform_2, window_bounds = array<i64: 8, 128>}]} {
    %c0 = arith.constant 0 : index
    %c0_0 = arith.constant 0 : index
    %c0_1 = arith.constant 0 : index
    %0 = vector.load %arg2[%c0, %c0_0, %c0_1] : memref<1x8x8xf32, #tpu.memory_space<vmem>>, vector<1x8x8xf32>
    %1 = vector.shape_cast %0 : vector<1x8x8xf32> to vector<8x8xf32>
    %c0_2 = arith.constant 0 : index
    %c0_3 = arith.constant 0 : index
    %2 = vector.load %arg3[%c0_2, %c0_3] : memref<8x128xf32, #tpu.memory_space<vmem>>, vector<8x128xf32>
    %cst = arith.constant dense<0.000000e+00> : vector<8x128xf32>
    %3 = tpu.matmul %1, %2, %cst {dimension_numbers = #tpu.dot_dimension_numbers<[1], [0], [0], [1], [0, 0, 1, 1], [], []>} : vector<8x8xf32>, vector<8x128xf32>, vector<8x128xf32> -> vector<8x128xf32>
    %c0_4 = arith.constant 0 : index
    %c0_5 = arith.constant 0 : index
    %4 = vector.load %arg4[%c0_4, %c0_5] : memref<8x128xf32, #tpu.memory_space<vmem>>, vector<8x128xf32>
    tpu.vector_store %arg4[%c0_4, %c0_5], %3 {strides = array<i32>} : memref<8x128xf32, #tpu.memory_space<vmem>>, vector<8x128xf32>,
    return
  }
  func.func @transform_0(%arg0: i32, %arg1: memref<3xi32, #tpu.memory_space<smem>>) -> (i32, i32, i32) {
    %0 = arith.index_cast %arg0 : i32 to index
    %1 = memref.load %arg1[%0] : memref<3xi32, #tpu.memory_space<smem>>
    %c0_i32 = arith.constant 0 : i32
    %c0_i32_0 = arith.constant 0 : i32
    %c0_i32_1 = arith.constant 0 : i32
    return %1, %c0_i32, %c0_i32_0 : i32, i32, i32
  }
  func.func @transform_1(%arg0: i32, %arg1: memref<3xi32, #tpu.memory_space<smem>>) -> (i32, i32) {
    %c0_i32 = arith.constant 0 : i32
    %c0_i32_0 = arith.constant 0 : i32
    return %c0_i32, %arg0 : i32, i32
  }
  func.func @transform_2(%arg0: i32, %arg1: memref<3xi32, #tpu.memory_space<smem>>) -> (i32, i32) {
    %c0_i32 = arith.constant 0 : i32
    %c0_i32_0 = arith.constant 0 : i32
    return %c0_i32, %arg0 : i32, i32
  }
}

</mosaic_0001>

<bundles_post_ra>
// kernel: glinear_forward.1
= control target key start
LH: loop header
LB: loop body
LE: loop exit
PB: predicated region body
PF: predicated region fallthrough
CT: control target
= control target key end

     0   :  { %s409_s0 = inlined_call_operand.vmem [shape: s32[3], index: 0, kind: input, shape index: {}]   ;;  %s410_s1 = inlined_call_operand.vmem [shape: f32[3,8,8], index: 1, kind: input, shape index: {}]   ;;  %s411_s2 = inlined_call_operand.vmem [shape: f32[8,384], index: 2, kind: input, shape index: {}]   ;;  %s412_s3 = inlined_call_operand.vmem [shape: f32[8,384], index: 3, kind: output, shape index: {}]  }
   0x1   :  { %s8_s14 = sshll.u32 %s409_s0, 4  ;;  %s9_s14 = int_to_ptr.vmem [resolvable:$true] %s8_s14 }
   0x2   :  { %s341_s15 = scalar_lea.vmem %s9_s14, 16  ;;  %p346_p1 = scmp.lt.s32.totalorder %s9_s14, %s9_s14 }
   0x3   :  { %p342_p0 = scmp.ne.s32.totalorder %s9_s14, %s341_s15  ;;  %p347_p2 = scmp.lt.s32.totalorder %s341_s15, %s341_s15 }
   0x5   :  { %p348_p3 = por %p347_p2, %p346_p1 }
   0x7   :  { %p349_p4 = pnand %p348_p3, %p342_p0 }
   0x9   :  { %352 = shalt.err (!%p349_p4)  }
   0xa   :  { %s363_s16 = smov [#allocation3]  }
   0xb   :  { %11 = dma.vmem_to_smem %s9_s14, 16, %s363_s16, [#allocation2] }
   0xc   :  { %357 = dma.done.wait [#allocation2], 16 }
   0xd   :  { %358 = vsyncadd [#allocation2], 4294967280 }
   0xe   :  { %13 = sfence }
   0xf   :  { %s389_s17 = smov 0  }
  0x10 LB: > { %s312_s0 = sadd.s32 4294967295, %s361_s17   ;;  %p316_p5 = scmp.ge.s32.totalorder %s361_s17, 1  ;;  %s361_s17 = sphi %s389_s17, %s19_s17  }
  0x11   : > { %p131_p6 = scmp.lt.s32.totalorder %s361_s17, 4 }
  0x13   : > { %p132_p7 = pnand %p316_p5, %p131_p6 }
  0x14   : > { %p162_p8 = scmp.lt.s32.totalorder (!%p132_p7), %s312_s0, 2  ;;  %s156_s18 = sld [smem:[#allocation3 + %s312_s0]] (!%p132_p7)  ;;  %v364_v0 = vmov (!%p132_p7), 0.0   ;;  %vm365_vm0 = vmmov (!%p132_p7), 0   ;;  %vm172_vm1 = vcmask (!%p132_p7), 64512  }
  0x15   : > { %135 = sbr.rel (%p132_p7) target bundleno = 246 (0xf6), region = 28  ;;  %325 = vmatprep.subr.mxu0 (!%p132_p7), %v364_v0  ;;  %327 = vmatprep.mubr.msk.f32.mxu0 (!%p132_p7), %vm365_vm0, %v364_v0 }
  0x1a   : > { %p157_p9 = scmp.lt.s32.totalorder (!%p132_p7), %s156_s18, 2 }
  0x1c   : > { %s414_s0 = smov (!%p162_p8, %s312_s0), 2  ;;  %s416_s18 = smov (!%p157_p9, %s156_s18), 2 }
  0x1d   : > { %s318_s19 = sshll.u32 %s414_s0, 3  ;;  %s317_s23 = sshll.u32 %s416_s18, 3 }
  0x1e   : > { %s165_s22 = scalar_lea.vmem %s411_s2, %s318_s19  ;;  %s160_s26 = scalar_lea.vmem %s410_s1, %s317_s23 }
  0x1f   : > { %v171_v1 = vld [vmem:[%s165_s22] sm:$0xff]  ;;  %s169_s29 = scalar_lea.vmem %s412_s3, %s318_s19 }
  0x20   : > { %326 = vmatpush3.msra.mxu0 %v171_v1  ;;  %v170_v2 = vld [vmem:[%s160_s26] sm:$0xff] }
  0x21   : > { %328 = vmatmul.mubr.msk.f32.vlgmr.msra.gmra.mrb[0].mxu0 %vm172_vm1, %v170_v2 }
  0xf4   : > { %v242_v3 = vpop.f32.mrb[0].mxu0 }
  0xf5   : > { %246 = vst [vmem:[%s169_s29] sm:$0xff] %v242_v3  ;;  %v329_v4 = vpop.f32.mrb[1].mxu0 }
  0xf6 PF: > { %s19_s17 = sadd.s32 1, %s361_s17  }
  0xf7   : > { %p16_p10 = scmp.ge.s32.totalorder %s19_s17, 5  }
  0xf9   :  { %18 = sbr.rel (!%p16_p10) target bundleno = 16 (0x10), region = 61 }

</bundles_post_ra>
